<compile_context>
chip_gen: v7x
topology: tpu7x:2x2x1
jax: 0.10.0
libtpu: 0.0.40
codegen_flags: <defaults>
</compile_context>

<pallas_src>
import functools
import math

import jax
import jax.numpy as jnp
import numpy as np
from jax import lax
from jax.experimental import pallas as pl
from jax.experimental.pallas import tpu as pltpu


def _round_up(x, m):
    return ((x + m - 1) // m) * m


# ----------------------------------------------------------------------------
# Kernel: whole decode loop inside one kernel invocation (no grid).
# ----------------------------------------------------------------------------
def decode_kernel(
    motion_ref,   # (N, B, I)   full motion sequence, resident
    hid0_ref,     # (B, H)      initial GRU hidden state
    ph0_ref,      # (B, H)      hid0 @ W_attn_h (precomputed in wrapper)
    encp_ref,     # (B, T, H)   enc(B-major) @ W_attn_e + b_attn (precomputed)
    enc_ref,      # (B, T, H)   encoder outputs, B-major
    wslab_ref,    # (R, W)      packed weight slab
    bslab_ref,    # (8, W)      packed bias slab
    out_ref,      # (N, B, P)   lane-dense packed per-step outputs (resident)
    *, N, H, I, O, T, P, row_off,
):
    f32 = jnp.float32
    B = hid0_ref.shape[0]
    o = row_off

    # ---- slab views: loaded once, loop-invariant (offsets are 8-aligned) ----
    w_pre_x = wslab_ref[o["w_pre_x"]:o["w_pre_x"] + I, 0:H]            # (I, H)
    w_pre_c = wslab_ref[o["w_pre_c"]:o["w_pre_c"] + H, 0:H]            # (H, H)
    w_gru_x = wslab_ref[o["w_gru"]:o["w_gru"] + H, 0:4 * H]            # (H, 4H)
    w_gru_h = wslab_ref[o["w_gru"] + H:o["w_gru"] + 2 * H, 0:4 * H]    # (H, 4H)
    w_hout = wslab_ref[o["w_hout"]:o["w_hout"] + H, 0:H + O]           # (H, H+O) = [W_attn_h | W_out]

    v_attn = bslab_ref[0:1, 0:H]                                       # (1, H)
    b_pre = bslab_ref[1:2, 0:H]
    bn_g = bslab_ref[2:3, 0:H]
    bn_b = bslab_ref[3:4, 0:H]
    b_gru = bslab_ref[4:5, 0:4 * H]
    b_out = bslab_ref[5:6, 0:O]

    enc_p = encp_ref[...]                                              # (B, T, H)
    enc = enc_ref[...]                                                 # (B, T, H)
    v3 = v_attn[None]                                                  # (1, 1, H) hoisted

    pad_cols = P - (O + H + T)
    zpad = jnp.zeros((B, pad_cols), f32) if pad_cols > 0 else None     # hoisted

    def step(s, carry):
        h_last, part_h = carry                                         # (B,H), (B,H)
        motion = motion_ref[s]                                         # (B, I)

        # ---------------- Attn_B (B-major, enc projection hoisted) ----------
        energy = jnp.tanh(enc_p + part_h[:, None, :])                  # (B, T, H)
        scores = jnp.sum(energy * v3, axis=2)                          # (B, T)
        m = jnp.max(scores, axis=1, keepdims=True)
        e = jnp.exp(scores - m)
        attn = e / jnp.sum(e, axis=1, keepdims=True)                   # exact softmax
        context = jnp.sum(attn[:, :, None] * enc, axis=1)              # (B, H)

        # ---------------- pre_linear: Linear -> BatchNorm1d(train) -> ReLU --
        pre = (jnp.dot(motion, w_pre_x, preferred_element_type=f32)
               + jnp.dot(context, w_pre_c, preferred_element_type=f32)
               + b_pre)                                                # (B, H)
        mean = jnp.mean(pre, axis=0, keepdims=True)
        var = jnp.mean(jnp.square(pre - mean), axis=0, keepdims=True)  # biased (train)
        x = jnp.maximum((pre - mean) * lax.rsqrt(var + 1e-5) * bn_g + bn_b, 0.0)

        # ---------------- GRU cell: split dots on repacked 4H slab ----------
        # g = x@Wx4 + h@Wh4 + b4 = [r_x+r_h, z_x+z_h, n_x, n_h]
        g = (jnp.dot(x, w_gru_x, preferred_element_type=f32)
             + jnp.dot(h_last, w_gru_h, preferred_element_type=f32) + b_gru)
        r = jax.nn.sigmoid(g[:, 0:H])
        z = jax.nn.sigmoid(g[:, H:2 * H])
        n = jnp.tanh(g[:, 2 * H:3 * H] + r * g[:, 3 * H:4 * H])
        h_new = (1.0 - z) * n + z * h_last                             # (B, H)

        # -------- fused [next-step attn projection | output projection] -----
        fused = jnp.dot(h_new, w_hout, preferred_element_type=f32)     # (B, H+O)
        part_h_next = fused[:, 0:H]
        out = fused[:, H:H + O] + b_out                                # (B, O)

        parts = [out, h_new, attn]
        if zpad is not None:
            parts.append(zpad)
        out_ref[s] = jnp.concatenate(parts, axis=1)                    # (B, P)
        return (h_new, part_h_next)

    lax.fori_loop(0, N, step, (hid0_ref[...], ph0_ref[...]),
                  unroll=bool(N <= 16))


# ----------------------------------------------------------------------------
# Host-side parameter packing into two VMEM-friendly slabs.
# ----------------------------------------------------------------------------
def pack_params(params, input_size, hidden_size, output_size):
    H, I, O = hidden_size, input_size, output_size
    W = max(4 * H, H + O)                          # slab lane width

    # GRU repack: x-side and h-side blocks of a (2H,4H) matrix so that
    # g = x@W[:H] + h@W[H:2H] + b = [r_x+r_h, z_x+z_h, n_x, n_h].
    w_ih, w_hh = params["w_ih"], params["w_hh"]              # (H, 3H) each
    b_ih, b_hh = params["b_ih"][0], params["b_hh"][0]        # (3H,)
    w_gru4 = jnp.zeros((2 * H, 4 * H), jnp.float32)
    w_gru4 = w_gru4.at[0:H, 0:2 * H].set(w_ih[:, 0:2 * H])               # r,z from x
    w_gru4 = w_gru4.at[H:2 * H, 0:2 * H].set(w_hh[:, 0:2 * H])           # r,z from h
    w_gru4 = w_gru4.at[0:H, 2 * H:3 * H].set(w_ih[:, 2 * H:3 * H])       # n from x
    w_gru4 = w_gru4.at[H:2 * H, 3 * H:4 * H].set(w_hh[:, 2 * H:3 * H])   # n from h
    b_gru4 = jnp.concatenate([b_ih[0:2 * H] + b_hh[0:2 * H],
                              b_ih[2 * H:3 * H], b_hh[2 * H:3 * H]])     # (4H,)

    # Fused hidden projection: h_new @ [W_attn_h | W_out] -> [part_h_next | out]
    w_hout = jnp.concatenate([params["w_attn_h"], params["w_out"]], axis=1)  # (H, H+O)

    mats = [
        ("w_pre_x", params["w_pre_x"]),   # (I, H)
        ("w_pre_c", params["w_pre_c"]),   # (H, H)
        ("w_gru", w_gru4),                # (2H, 4H)
        ("w_hout", w_hout),               # (H, H+O)
    ]
    row_off, row = {}, 0
    for name, mat in mats:
        row_off[name] = row
        row += _round_up(mat.shape[0], 8)            # 8-aligned slab offsets
    wslab = jnp.zeros((row, W), jnp.float32)
    for name, mat in mats:
        r0 = row_off[name]
        wslab = wslab.at[r0:r0 + mat.shape[0], 0:mat.shape[1]].set(mat)

    rows = [params["v"][0], params["b_pre"][0], params["bn_g"][0],
            params["bn_b"][0], b_gru4, params["b_out"][0]]
    bslab = jnp.zeros((8, W), jnp.float32)
    for i, r in enumerate(rows):
        bslab = bslab.at[i, 0:r.shape[0]].set(r)

    # Attention projections kept separately for the host-side (step-invariant)
    # precompute in the wrapper.
    return {"wslab": wslab, "bslab": bslab, "row_off": row_off,
            "w_attn_e": params["w_attn_e"], "w_attn_h": params["w_attn_h"],
            "b_attn": params["b_attn"],
            "H": H, "I": I, "O": O}


# ----------------------------------------------------------------------------
# Wrappers.
# ----------------------------------------------------------------------------
def bahdanau_decode(packed, motion_seq, last_hidden, encoder_outputs):
    """Runs N teacher-forced decoder steps inside ONE grid-less pallas_call.

    motion_seq: (N, B, I); last_hidden: (L, B, H); encoder_outputs: (T, B, H)
    Returns (outputs (N,B,O), hiddens (N,B,H), attn_weights (N,B,T)).
    """
    H, I, O = packed["H"], packed["I"], packed["O"]
    N, B, _ = motion_seq.shape
    T = encoder_outputs.shape[0]
    P = max(128, _round_up(O + H + T, 128))          # lane-dense packed width

    wslab, bslab = packed["wslab"], packed["bslab"]

    # Step-invariant precompute (once per decode call, in XLA, not per step):
    hid0 = last_hidden[-1]                                        # (B, H)
    enc_bt = jnp.transpose(encoder_outputs, (1, 0, 2))            # (B, T, H)
    enc_proj = enc_bt @ packed["w_attn_e"] + packed["b_attn"]     # (B, T, H)
    part_h0 = hid0 @ packed["w_attn_h"]                           # (B, H)

    kernel = functools.partial(
        decode_kernel, N=N, H=H, I=I, O=O, T=T, P=P, row_off=packed["row_off"])

    vmem = pltpu.MemorySpace.VMEM
    packed_out = pl.pallas_call(
        kernel,
        out_shape=jax.ShapeDtypeStruct((N, B, P), jnp.float32),
        in_specs=[pl.BlockSpec(memory_space=vmem) for _ in range(7)],
        out_specs=pl.BlockSpec(memory_space=vmem),
        compiler_params=pltpu.CompilerParams(
            vmem_limit_bytes=32 * 1024 * 1024),
    )(motion_seq, hid0, part_h0, enc_proj, enc_bt, wslab, bslab)

    outputs = packed_out[:, :, 0:O]
    hiddens = packed_out[:, :, O:O + H]
    attns = packed_out[:, :, O + H:O + H + T]
    return outputs, hiddens, attns


def bahdanau_decoder_step(packed, motion_input, last_hidden, encoder_outputs):
    """Single step — mirrors BahdanauAttnDecoderRNN.forward -> (output, hidden, attn)."""
    outs, hids, attns = bahdanau_decode(
        packed, motion_input[None], last_hidden, encoder_outputs)
    return outs[0], hids, attns[0][:, None, :]   # (B,O), (1,B,H), (B,1,T)


# ----------------------------------------------------------------------------
# Pure-JAX reference (same math as the PyTorch module, un-fused).
# ----------------------------------------------------------------------------
def reference_forward(params, motion_input, last_hidden, encoder_outputs):
    h_last = last_hidden[-1]
    T, B, H = encoder_outputs.shape
    enc_bt = jnp.transpose(encoder_outputs, (1, 0, 2))
    energy = jnp.tanh(enc_bt @ params["w_attn_e"]
                      + (h_last @ params["w_attn_h"])[:, None, :]
                      + params["b_attn"][None])
    scores = jnp.sum(energy * params["v"][None], axis=2)
    attn = jax.nn.softmax(scores, axis=1)
    context = jnp.einsum("bt,bth->bh", attn, enc_bt)
    pre = (motion_input @ params["w_pre_x"] + context @ params["w_pre_c"]
           + params["b_pre"])
    mean = pre.mean(0, keepdims=True)
    var = jnp.square(pre - mean).mean(0, keepdims=True)
    pre = (pre - mean) / jnp.sqrt(var + 1e-5) * params["bn_g"] + params["bn_b"]
    pre = jnp.maximum(pre, 0.0)
    gi = pre @ params["w_ih"] + params["b_ih"]
    gh = h_last @ params["w_hh"] + params["b_hh"]
    i_r, i_z, i_n = gi[:, :H], gi[:, H:2 * H], gi[:, 2 * H:]
    h_r, h_z, h_n = gh[:, :H], gh[:, H:2 * H], gh[:, 2 * H:]
    r = jax.nn.sigmoid(i_r + h_r)
    z = jax.nn.sigmoid(i_z + h_z)
    n = jnp.tanh(i_n + r * h_n)
    h_new = (1.0 - z) * n + z * h_last
    out = h_new @ params["w_out"] + params["b_out"]
    return out, h_new[None], attn[:, None, :]


def reference_decode(params, motion_seq, last_hidden, encoder_outputs):
    outs, hids, attns = [], [], []
    h = last_hidden
    for t in range(motion_seq.shape[0]):
        o, h, a = reference_forward(params, motion_seq[t], h, encoder_outputs)
        outs.append(o)
        hids.append(h[0])
        attns.append(a[:, 0, :])
    return jnp.stack(outs), jnp.stack(hids), jnp.stack(attns)


def init_params(key, input_size, hidden_size, output_size):
    """Deterministic synthetic parameter init (shapes follow the nn.Module __init__)."""
    H, I, O = hidden_size, input_size, output_size
    ks = jax.random.split(key, 16)

    def u(k, shape, fan_in):
        s = 1.0 / math.sqrt(fan_in)
        return jax.random.uniform(k, shape, jnp.float32, -s, s)

    w_attn = u(ks[0], (2 * H, H), 2 * H)            # nn.Linear(2H, H), pre-transposed
    w_pre = u(ks[3], (I + H, H), I + H)             # nn.Linear(I+H, H), pre-transposed
    return {
        "w_attn_h": w_attn[:H, :],
        "w_attn_e": w_attn[H:, :],
        "b_attn": u(ks[1], (1, H), 2 * H),
        "v": (jax.random.normal(ks[2], (1, H)) * (1.0 / math.sqrt(H))).astype(jnp.float32),
        "w_pre_x": w_pre[:I, :],
        "w_pre_c": w_pre[I:, :],
        "b_pre": u(ks[4], (1, H), I + H),
        "bn_g": jnp.ones((1, H), jnp.float32),       # BatchNorm1d default init
        "bn_b": jnp.zeros((1, H), jnp.float32),
        "w_ih": u(ks[5], (H, 3 * H), H),             # GRU weights, pre-transposed
        "w_hh": u(ks[6], (H, 3 * H), H),
        "b_ih": u(ks[7], (1, 3 * H), H),
        "b_hh": u(ks[8], (1, 3 * H), H),
        "w_out": u(ks[9], (H, O), H),                # nn.Linear(H, O), pre-transposed
        "b_out": u(ks[10], (1, O), H),
    }


if __name__ == "__main__":
    B, T, H, I, O, N = 2, 8, 32, 4, 16, 4

    key = jax.random.PRNGKey(0)
    k_p, k_m, k_h, k_e, k_seq = jax.random.split(key, 5)
    params = init_params(k_p, I, H, O)
    packed = pack_params(params, I, H, O)

    motion_input = jax.random.normal(k_m, (B, I), jnp.float32)
    last_hidden = jax.random.normal(k_h, (1, B, H), jnp.float32)
    encoder_outputs = jax.random.normal(k_e, (T, B, H), jnp.float32)

    tol = dict(rtol=5e-3, atol=5e-3)

    # ---- single decoder step (PyTorch forward semantics) ----
    out, hidden, attn_w = bahdanau_decoder_step(
        packed, motion_input, last_hidden, encoder_outputs)
    jax.block_until_ready((out, hidden, attn_w))
    r_out, r_hidden, r_attn = reference_forward(
        params, motion_input, last_hidden, encoder_outputs)
    assert out.shape == (B, O)
    assert hidden.shape == (1, B, H)
    assert attn_w.shape == (B, 1, T)
    np.testing.assert_allclose(np.asarray(out), np.asarray(r_out), **tol)
    np.testing.assert_allclose(np.asarray(hidden), np.asarray(r_hidden), **tol)
    np.testing.assert_allclose(np.asarray(attn_w), np.asarray(r_attn), **tol)

    # ---- N teacher-forced decode steps amortized inside ONE pallas_call ----
    motion_seq = jax.random.normal(k_seq, (N, B, I), jnp.float32)
    outs, hids, attns = bahdanau_decode(packed, motion_seq, last_hidden, encoder_outputs)
    jax.block_until_ready((outs, hids, attns))
    r_outs, r_hids, r_attns = reference_decode(
        params, motion_seq, last_hidden, encoder_outputs)
    np.testing.assert_allclose(np.asarray(outs), np.asarray(r_outs), **tol)
    np.testing.assert_allclose(np.asarray(hids), np.asarray(r_hids), **tol)
    np.testing.assert_allclose(np.asarray(attns), np.asarray(r_attns), **tol)

    print("KERNEL_OK")
</pallas_src>

<mosaic_0001>
module attributes {stable_mosaic.version = 11 : i64} {
  func.func @decode_kernel(%arg0: memref<1x2x4xf32, #tpu.memory_space<vmem>>, %arg1: memref<2x32xf32, #tpu.memory_space<vmem>>, %arg2: memref<2x32xf32, #tpu.memory_space<vmem>>, %arg3: memref<2x8x32xf32, #tpu.memory_space<vmem>>, %arg4: memref<2x8x32xf32, #tpu.memory_space<vmem>>, %arg5: memref<136x128xf32, #tpu.memory_space<vmem>>, %arg6: memref<8x128xf32, #tpu.memory_space<vmem>>, %arg7: memref<1x2x128xf32, #tpu.memory_space<vmem>>) attributes {dimension_semantics = [], scalar_prefetch = 0 : i64, scratch_operands = 0 : i64, tpu.core_type = #tpu.core_type<tc>} {
    %c0 = arith.constant 0 : index
    %c0_0 = arith.constant 0 : index
    %0 = vector.load %arg5[%c0, %c0_0] : memref<136x128xf32, #tpu.memory_space<vmem>>, vector<4x32xf32>
    %c8 = arith.constant 8 : index
    %c0_1 = arith.constant 0 : index
    %1 = vector.load %arg5[%c8, %c0_1] : memref<136x128xf32, #tpu.memory_space<vmem>>, vector<32x32xf32>
    %c40 = arith.constant 40 : index
    %c0_2 = arith.constant 0 : index
    %2 = vector.load %arg5[%c40, %c0_2] : memref<136x128xf32, #tpu.memory_space<vmem>>, vector<32x128xf32>
    %c72 = arith.constant 72 : index
    %c0_3 = arith.constant 0 : index
    %3 = vector.load %arg5[%c72, %c0_3] : memref<136x128xf32, #tpu.memory_space<vmem>>, vector<32x128xf32>
    %c104 = arith.constant 104 : index
    %c0_4 = arith.constant 0 : index
    %4 = vector.load %arg5[%c104, %c0_4] : memref<136x128xf32, #tpu.memory_space<vmem>>, vector<32x48xf32>
    %c0_5 = arith.constant 0 : index
    %c0_6 = arith.constant 0 : index
    %5 = vector.load %arg6[%c0_5, %c0_6] : memref<8x128xf32, #tpu.memory_space<vmem>>, vector<1x32xf32>
    %c1 = arith.constant 1 : index
    %c0_7 = arith.constant 0 : index
    %6 = vector.load %arg6[%c1, %c0_7] : memref<8x128xf32, #tpu.memory_space<vmem>>, vector<1x32xf32>
    %c2 = arith.constant 2 : index
    %c0_8 = arith.constant 0 : index
    %7 = vector.load %arg6[%c2, %c0_8] : memref<8x128xf32, #tpu.memory_space<vmem>>, vector<1x32xf32>
    %c3 = arith.constant 3 : index
    %c0_9 = arith.constant 0 : index
    %8 = vector.load %arg6[%c3, %c0_9] : memref<8x128xf32, #tpu.memory_space<vmem>>, vector<1x32xf32>
    %c4 = arith.constant 4 : index
    %c0_10 = arith.constant 0 : index
    %9 = vector.load %arg6[%c4, %c0_10] : memref<8x128xf32, #tpu.memory_space<vmem>>, vector<1x128xf32>
    %c5 = arith.constant 5 : index
    %c0_11 = arith.constant 0 : index
    %10 = vector.load %arg6[%c5, %c0_11] : memref<8x128xf32, #tpu.memory_space<vmem>>, vector<1x16xf32>
    %c0_12 = arith.constant 0 : index
    %c0_13 = arith.constant 0 : index
    %c0_14 = arith.constant 0 : index
    %11 = vector.load %arg3[%c0_12, %c0_13, %c0_14] : memref<2x8x32xf32, #tpu.memory_space<vmem>>, vector<2x8x32xf32>
    %c0_15 = arith.constant 0 : index
    %c0_16 = arith.constant 0 : index
    %c0_17 = arith.constant 0 : index
    %12 = vector.load %arg4[%c0_15, %c0_16, %c0_17] : memref<2x8x32xf32, #tpu.memory_space<vmem>>, vector<2x8x32xf32>
    %13 = vector.shape_cast %5 : vector<1x32xf32> to vector<1x1x32xf32>
    %cst = arith.constant 0.000000e+00 : f32
    %14 = vector.broadcast %cst : f32 to vector<2x72xf32>
    %c0_18 = arith.constant 0 : index
    %c0_19 = arith.constant 0 : index
    %15 = vector.load %arg1[%c0_18, %c0_19] : memref<2x32xf32, #tpu.memory_space<vmem>>, vector<2x32xf32>
    %c0_20 = arith.constant 0 : index
    %c0_21 = arith.constant 0 : index
    %16 = vector.load %arg2[%c0_20, %c0_21] : memref<2x32xf32, #tpu.memory_space<vmem>>, vector<2x32xf32>
    %c0_i32 = arith.constant 0 : i32
    %17 = arith.index_cast %c0_i32 : i32 to index
    %c0_22 = arith.constant 0 : index
    %c0_23 = arith.constant 0 : index
    %18 = vector.load %arg0[%17, %c0_22, %c0_23] : memref<1x2x4xf32, #tpu.memory_space<vmem>>, vector<1x2x4xf32>
    %19 = vector.shape_cast %18 : vector<1x2x4xf32> to vector<2x4xf32>
    %20 = vector.shape_cast %16 : vector<2x32xf32> to vector<2x1x32xf32>
    %21 = vector.broadcast %20 : vector<2x1x32xf32> to vector<2x8x32xf32>
    %22 = arith.addf %11, %21 : vector<2x8x32xf32>
    %23 = math.tanh %22 : vector<2x8x32xf32>
    %24 = vector.broadcast %13 : vector<1x1x32xf32> to vector<2x8x32xf32>
    %25 = arith.mulf %23, %24 : vector<2x8x32xf32>
    %cst_24 = arith.constant dense<0.000000e+00> : vector<2x8xf32>
    %26 = vector.multi_reduction <add>, %25, %cst_24 [2] : vector<2x8x32xf32> to vector<2x8xf32>
    %cst_25 = arith.constant dense<0xFF800000> : vector<2xf32>
    %27 = vector.multi_reduction <maximumf>, %26, %cst_25 [1] : vector<2x8xf32> to vector<2xf32>
    %28 = vector.shape_cast %27 : vector<2xf32> to vector<2x1xf32>
    %29 = vector.broadcast %28 : vector<2x1xf32> to vector<2x8xf32>
    %30 = arith.subf %26, %29 : vector<2x8xf32>
    %31 = math.exp %30 : vector<2x8xf32>
    %cst_26 = arith.constant dense<0.000000e+00> : vector<2xf32>
    %32 = vector.multi_reduction <add>, %31, %cst_26 [1] : vector<2x8xf32> to vector<2xf32>
    %33 = vector.shape_cast %32 : vector<2xf32> to vector<2x1xf32>
    %34 = vector.broadcast %33 : vector<2x1xf32> to vector<2x8xf32>
    %35 = arith.divf %31, %34 : vector<2x8xf32>
    %36 = vector.shape_cast %35 : vector<2x8xf32> to vector<2x8x1xf32>
    %37 = vector.broadcast %36 : vector<2x8x1xf32> to vector<2x8x32xf32>
    %38 = arith.mulf %37, %12 : vector<2x8x32xf32>
    %cst_27 = arith.constant dense<0.000000e+00> : vector<2x32xf32>
    %39 = vector.multi_reduction <add>, %38, %cst_27 [1] : vector<2x8x32xf32> to vector<2x32xf32>
    %cst_28 = arith.constant dense<0.000000e+00> : vector<2x32xf32>
    %40 = tpu.matmul %19, %0, %cst_28 {dimension_numbers = #tpu.dot_dimension_numbers<[1], [0], [0], [1], [0, 0, 1, 1], [], []>} : vector<2x4xf32>, vector<4x32xf32>, vector<2x32xf32> -> vector<2x32xf32>
    %cst_29 = arith.constant dense<0.000000e+00> : vector<2x32xf32>
    %41 = tpu.matmul %39, %1, %cst_29 {dimension_numbers = #tpu.dot_dimension_numbers<[1], [0], [0], [1], [0, 0, 1, 1], [], []>} : vector<2x32xf32>, vector<32x32xf32>, vector<2x32xf32> -> vector<2x32xf32>
    %42 = arith.addf %40, %41 : vector<2x32xf32>
    %43 = vector.broadcast %6 : vector<1x32xf32> to vector<2x32xf32>
    %44 = arith.addf %42, %43 : vector<2x32xf32>
    %cst_30 = arith.constant dense<0.000000e+00> : vector<32xf32>
    %45 = vector.multi_reduction <add>, %44, %cst_30 [0] : vector<2x32xf32> to vector<32xf32>
    %46 = vector.shape_cast %45 : vector<32xf32> to vector<1x32xf32>
    %cst_31 = arith.constant 2.000000e+00 : f32
    %47 = vector.broadcast %cst_31 : f32 to vector<1x32xf32>
    %48 = arith.divf %46, %47 : vector<1x32xf32>
    %49 = vector.broadcast %48 : vector<1x32xf32> to vector<2x32xf32>
    %50 = arith.subf %44, %49 : vector<2x32xf32>
    %51 = arith.mulf %50, %50 : vector<2x32xf32>
    %cst_32 = arith.constant dense<0.000000e+00> : vector<32xf32>
    %52 = vector.multi_reduction <add>, %51, %cst_32 [0] : vector<2x32xf32> to vector<32xf32>
    %53 = vector.shape_cast %52 : vector<32xf32> to vector<1x32xf32>
    %cst_33 = arith.constant 2.000000e+00 : f32
    %54 = vector.broadcast %cst_33 : f32 to vector<1x32xf32>
    %55 = arith.divf %53, %54 : vector<1x32xf32>
    %56 = vector.broadcast %48 : vector<1x32xf32> to vector<2x32xf32>
    %57 = arith.subf %44, %56 : vector<2x32xf32>
    %cst_34 = arith.constant 9.99999974E-6 : f32
    %58 = vector.broadcast %cst_34 : f32 to vector<1x32xf32>
    %59 = arith.addf %55, %58 : vector<1x32xf32>
    %60 = math.rsqrt %59 : vector<1x32xf32>
    %61 = vector.broadcast %60 : vector<1x32xf32> to vector<2x32xf32>
    %62 = arith.mulf %57, %61 : vector<2x32xf32>
    %63 = vector.broadcast %7 : vector<1x32xf32> to vector<2x32xf32>
    %64 = arith.mulf %62, %63 : vector<2x32xf32>
    %65 = vector.broadcast %8 : vector<1x32xf32> to vector<2x32xf32>
    %66 = arith.addf %64, %65 : vector<2x32xf32>
    %cst_35 = arith.constant 0.000000e+00 : f32
    %67 = vector.broadcast %cst_35 : f32 to vector<2x32xf32>
    %68 = arith.maximumf %66, %67 : vector<2x32xf32>
    %cst_36 = arith.constant dense<0.000000e+00> : vector<2x128xf32>
    %69 = tpu.matmul %68, %2, %cst_36 {dimension_numbers = #tpu.dot_dimension_numbers<[1], [0], [0], [1], [0, 0, 1, 1], [], []>} : vector<2x32xf32>, vector<32x128xf32>, vector<2x128xf32> -> vector<2x128xf32>
    %cst_37 = arith.constant dense<0.000000e+00> : vector<2x128xf32>
    %70 = tpu.matmul %15, %3, %cst_37 {dimension_numbers = #tpu.dot_dimension_numbers<[1], [0], [0], [1], [0, 0, 1, 1], [], []>} : vector<2x32xf32>, vector<32x128xf32>, vector<2x128xf32> -> vector<2x128xf32>
    %71 = arith.addf %69, %70 : vector<2x128xf32>
    %72 = vector.broadcast %9 : vector<1x128xf32> to vector<2x128xf32>
    %73 = arith.addf %71, %72 : vector<2x128xf32>
    %74 = vector.extract_strided_slice %73 {offsets = [0, 0], sizes = [2, 32], strides = [1, 1]} : vector<2x128xf32> to vector<2x32xf32>
    %75 = arith.negf %74 : vector<2x32xf32>
    %76 = math.exp %75 : vector<2x32xf32>
    %cst_38 = arith.constant 1.000000e+00 : f32
    %77 = vector.broadcast %cst_38 : f32 to vector<2x32xf32>
    %78 = arith.addf %77, %76 : vector<2x32xf32>
    %79 = arith.divf %77, %78 : vector<2x32xf32>
    %80 = vector.extract_strided_slice %73 {offsets = [0, 32], sizes = [2, 32], strides = [1, 1]} : vector<2x128xf32> to vector<2x32xf32>
    %81 = arith.negf %80 : vector<2x32xf32>
    %82 = math.exp %81 : vector<2x32xf32>
    %cst_39 = arith.constant 1.000000e+00 : f32
    %83 = vector.broadcast %cst_39 : f32 to vector<2x32xf32>
    %84 = arith.addf %83, %82 : vector<2x32xf32>
    %85 = arith.divf %83, %84 : vector<2x32xf32>
    %86 = vector.extract_strided_slice %73 {offsets = [0, 64], sizes = [2, 32], strides = [1, 1]} : vector<2x128xf32> to vector<2x32xf32>
    %87 = vector.extract_strided_slice %73 {offsets = [0, 96], sizes = [2, 32], strides = [1, 1]} : vector<2x128xf32> to vector<2x32xf32>
    %88 = arith.mulf %79, %87 : vector<2x32xf32>
    %89 = arith.addf %86, %88 : vector<2x32xf32>
    %90 = math.tanh %89 : vector<2x32xf32>
    %cst_40 = arith.constant 1.000000e+00 : f32
    %91 = vector.broadcast %cst_40 : f32 to vector<2x32xf32>
    %92 = arith.subf %91, %85 : vector<2x32xf32>
    %93 = arith.mulf %92, %90 : vector<2x32xf32>
    %94 = arith.mulf %85, %15 : vector<2x32xf32>
    %95 = arith.addf %93, %94 : vector<2x32xf32>
    %cst_41 = arith.constant dense<0.000000e+00> : vector<2x48xf32>
    %96 = tpu.matmul %95, %4, %cst_41 {dimension_numbers = #tpu.dot_dimension_numbers<[1], [0], [0], [1], [0, 0, 1, 1], [], []>} : vector<2x32xf32>, vector<32x48xf32>, vector<2x48xf32> -> vector<2x48xf32>
    %97 = vector.extract_strided_slice %96 {offsets = [0, 0], sizes = [2, 32], strides = [1, 1]} : vector<2x48xf32> to vector<2x32xf32>
    %98 = vector.extract_strided_slice %96 {offsets = [0, 32], sizes = [2, 16], strides = [1, 1]} : vector<2x48xf32> to vector<2x16xf32>
    %99 = vector.broadcast %10 : vector<1x16xf32> to vector<2x16xf32>
    %100 = arith.addf %98, %99 : vector<2x16xf32>
    %101 = tpu.concatenate %100, %95, %35, %14 in 1 : vector<2x16xf32>, vector<2x32xf32>, vector<2x8xf32>, vector<2x72xf32> -> vector<2x128xf32>
    %102 = arith.index_cast %c0_i32 : i32 to index
    %c0_42 = arith.constant 0 : index
    %c0_43 = arith.constant 0 : index
    %103 = vector.load %arg7[%102, %c0_42, %c0_43] : memref<1x2x128xf32, #tpu.memory_space<vmem>>, vector<1x2x128xf32>
    %104 = vector.shape_cast %103 : vector<1x2x128xf32> to vector<2x128xf32>
    %105 = vector.shape_cast %101 : vector<2x128xf32> to vector<1x2x128xf32>
    tpu.vector_store %arg7[%102, %c0_42, %c0_43], %105 {strides = array<i32>} : memref<1x2x128xf32, #tpu.memory_space<vmem>>, vector<1x2x128xf32>,
    %c1_i32 = arith.constant 1 : i32
    return
  }
}

</mosaic_0001>

<bundles_post_ra>
// kernel: tpu_custom_call.1
= control target key start
LH: loop header
LB: loop body
LE: loop exit
PB: predicated region body
PF: predicated region fallthrough
CT: control target
= control target key end

     0   :  { %12 = vsyncpa [#allocation3], 0  ;;  %s1219_s0 = inlined_call_operand.hbm [shape: f32[1,2,4], index: 0, kind: input, shape index: {}]   ;;  %s1220_s1 = inlined_call_operand.vmem [shape: f32[2,32], index: 1, kind: input, shape index: {}]   ;;  %s1221_s2 = inlined_call_operand.vmem [shape: f32[2,32], index: 2, kind: input, shape index: {}]   ;;  %s1222_s3 = inlined_call_operand.hbm [shape: f32[2,8,32], index: 3, kind: input, shape index: {}]   ;;  %s1223_s4 = inlined_call_operand.hbm [shape: f32[2,8,32], index: 4, kind: input, shape index: {}]   ;;  %s1224_s5 = inlined_call_operand.hbm [shape: f32[136,128], index: 5, kind: input, shape index: {}]   ;;  %s1225_s6 = inlined_call_operand.vmem [shape: f32[8,128], index: 6, kind: input, shape index: {}]   ;;  %s1226_s7 = inlined_call_operand.hbm [shape: f32[1,2,128], index: 7, kind: output, shape index: {}]  }
   0x1   :  { %13 = vsyncpa [#allocation6], 0 }
   0x2   :  { %14 = vsyncpa [#allocation9], 0 }
   0x3   :  { %15 = vsyncpa [#allocation4], 0  ;;  %s1020_s24 = smov [#allocation5]   ;;  %s902_s28 = scalar_lea.hbm %s1222_s3, 256 }
   0x4   :  { %s35_s25 = sshll.u32 %s1020_s24, 4  ;;  %p903_p0 = scmp.ne.s32.totalorder %s1222_s3, %s902_s28  ;;  %s36_s25 = int_to_ptr.vmem [resolvable:$true] %s35_s25 }
   0x5   :  { %p906_p1 = scmp.lt.u32.totalorder %s902_s28, %s1222_s3 }
   0x7   :  { %p908_p2 = pnand %p906_p1, %p903_p0 }
   0x9   :  { %911 = shalt.err (!%p908_p2)
}
   0xa   :  { %s912_s10 = scalar_lea.vmem %s36_s25, 256  ;;  %p917_p4 = scmp.lt.s32.totalorder %s36_s25, %s36_s25 }
   0xb   :  { %p913_p3 = scmp.ne.s32.totalorder %s36_s25, %s912_s10  ;;  %p918_p5 = scmp.lt.s32.totalorder %s912_s10, %s912_s10 }
   0xd   :  { %p919_p6 = por %p918_p5, %p917_p4 }
   0xf   :  { %p920_p7 = pnand %p919_p6, %p913_p3 }
  0x11   :  { %923 = shalt.err (!%p920_p7)
}
  0x12   :  { %s1021_s11 = smov 128   ;;  %s1022_s12 = smov 8  }
  0x13   :  { %41 = dma.hbm_to_vmem [thread:$0]  %s1222_s3, 256, %s36_s25, [#allocation6], %s1021_s11, %s1021_s11, %s1022_s12  }
  0x14   :  { %s1023_s15 = smov [#allocation2]   ;;  %s1024_s17 = smov [#allocation7]  }
  0x15   :  { %s22_s16 = sshll.u32 %s1023_s15, 4  ;;  %s47_s18 = sshll.u32 %s1024_s17, 4  ;;  %s23_s16 = int_to_ptr.vmem [resolvable:$true] %s22_s16  ;;  %s48_s18 = int_to_ptr.vmem [resolvable:$true] %s47_s18 }
  0x16   :  { %s924_s21 = scalar_lea.hbm %s1219_s0, 32 }
  0x17   :  { %p925_p8 = scmp.ne.s32.totalorder %s1219_s0, %s924_s21  ;;  %p928_p9 = scmp.lt.u32.totalorder %s924_s21, %s1219_s0 }
  0x19   :  { %p930_p10 = pnand %p928_p9, %p925_p8 }
  0x1b   :  { %933 = shalt.err (!%p930_p10)
}
  0x1c   :  { %s934_s3 = scalar_lea.vmem %s23_s16, 32  ;;  %p939_p12 = scmp.lt.s32.totalorder %s23_s16, %s23_s16 }
  0x1d   :  { %p935_p11 = scmp.ne.s32.totalorder %s23_s16, %s934_s3  ;;  %p940_p13 = scmp.lt.s32.totalorder %s934_s3, %s934_s3 }
  0x1f   :  { %p941_p0 = por %p940_p13, %p939_p12 }
  0x21   :  { %p942_p1 = pnand %p941_p0, %p935_p11 }
  0x23   :  { %945 = shalt.err (!%p942_p1)
}
  0x24   :  { %25 = dma.hbm_to_vmem [thread:$0]  %s1219_s0, 32, %s23_s16, [#allocation3]  }
  0x25   :  { %s946_s30 = scalar_lea.hbm %s1223_s4, 256 }
  0x26   :  { %p947_p2 = scmp.ne.s32.totalorder %s1223_s4, %s946_s30  ;;  %p950_p3 = scmp.lt.u32.totalorder %s946_s30, %s1223_s4 }
  0x28   :  { %p952_p4 = pnand %p950_p3, %p947_p2 }
  0x2a   :  { %955 = shalt.err (!%p952_p4)
}
  0x2b   :  { %s956_s14 = scalar_lea.vmem %s48_s18, 256  ;;  %p961_p6 = scmp.lt.s32.totalorder %s48_s18, %s48_s18 }
  0x2c   :  { %p957_p5 = scmp.ne.s32.totalorder %s48_s18, %s956_s14  ;;  %p962_p7 = scmp.lt.s32.totalorder %s956_s14, %s956_s14 }
  0x2e   :  { %p963_p8 = por %p962_p7, %p961_p6 }
  0x30   :  { %p964_p9 = pnand %p963_p8, %p957_p5 }
  0x32   :  { %967 = shalt.err (!%p964_p9)
}
  0x33   :  { %53 = dma.hbm_to_vmem [thread:$0]  %s1223_s4, 256, %s48_s18, [#allocation6], %s1021_s11, %s1021_s11, %s1022_s12  }
  0x34   :  { %s1025_s16 = smov [#allocation8]   ;;  %s968_s21 = scalar_lea.hbm %s1224_s5, 2176 }
  0x35   :  { %s59_s17 = sshll.u32 %s1025_s16, 4  ;;  %p969_p10 = scmp.ne.s32.totalorder %s1224_s5, %s968_s21  ;;  %s60_s17 = int_to_ptr.vmem [resolvable:$true] %s59_s17 }
  0x36   :  { %p972_p11 = scmp.lt.u32.totalorder %s968_s21, %s1224_s5 }
  0x38   :  { %p974_p12 = pnand %p972_p11, %p969_p10 }
  0x3a   :  { %977 = shalt.err (!%p974_p12)
}
  0x3b   :  { %s978_s3 = scalar_lea.vmem %s60_s17, 2176  ;;  %p983_p0 = scmp.lt.s32.totalorder %s60_s17, %s60_s17 }
  0x3c   :  { %p979_p13 = scmp.ne.s32.totalorder %s60_s17, %s978_s3  ;;  %p984_p1 = scmp.lt.s32.totalorder %s978_s3, %s978_s3 }
  0x3e   :  { %p985_p2 = por %p984_p1, %p983_p0 }
  0x40   :  { %p986_p3 = pnand %p985_p2, %p979_p13 }
  0x42   :  { %989 = shalt.err (!%p986_p3)
}
  0x43   :  { %65 = dma.hbm_to_vmem [thread:$0]  %s1224_s5, 2176, %s60_s17, [#allocation9], %s1021_s11, %s1021_s11, %s1022_s12  }
  0x44   :  { %1012 = dma.done.wait [#allocation3], 32  }
  0x45   :  { %1013 = vsyncadd [#allocation3], 4294967264 }
  0x46   :  { %1014 = dma.done.wait [#allocation6], 512  }
  0x47   :  { %1015 = vsyncadd [#allocation6], 4294966784 }
  0x48   :  { %1016 = dma.done.wait [#allocation9], 2176  }
  0x49   :  { %1017 = vsyncadd [#allocation9], 4294965120  ;;  %v122_v0 = vlaneseq  ;;  %v1026_v1 = vmov 1966171168   ;;  %v103_v10 = vld [vmem:[#allocation5] sm:$0xff]  ;;  %v104_v13 = vld [vmem:[#allocation5 + $0x8] sm:$0xff] }
  0x4a   :  { %v120_v2 = vunpack.c.l.s4 %v1026_v1  ;;  %v755_v7 = vld.sshfl [vmem:[%s1221_s2] sm:$0x11 pattern:$0x75316420]  ;;  %vm153_vm0 = vcmask 261120   ;;  %vm172_vm1 = vcmask 1041409  }
  0x4b   :  { %v1133_v3 = vshrl.u32 %v122_v0, 7  ;;  %v118_v8 = vcombine.high %v755_v7, %v755_v7  ;;  %v756_v17 = vld [vmem:[%s1225_s6] ss:$0 sm:$0xff]  ;;  %v1145_v24 = vand.u32 127, %v122_v0  ;;  %vm175_vm2 = vcmask 58368   ;;  %v81_v56 = vld [vmem:[#allocation8 + $0x8] sm:$0xff] }
  0x4c   :  { %v121_v4 = vunpack.c.0.s8 %v120_v2  ;;  %v1027_v32 = vmov 0   ;;  %v82_v57 = vld [vmem:[#allocation8 + $0x10] sm:$0xff]  ;;  %v1028_v59 = vmov 0.0|0.0   ;;  %v83_v60 = vld [vmem:[#allocation8 + $0x18] sm:$0xff]  ;;  %v84_v61 = vld [vmem:[#allocation8 + $0x20] sm:$0xff]  ;;  %vm337_vm3 = vcmask 1043456  }
  0x4d   :  { %v135_v6 = vsub.s32 0, %v1133_v3  ;;  %v166_v26 = vsub.s32 %v1145_v24, %v1133_v3  ;;  %881 = vset.pattern.permute.xlu0 %v1027_v32  ;;  %880 = vset.pattern.permute.xlu1 %v1027_v32  ;;  %v186_v33 = vsub.s32 1, %v1133_v3  ;;  %v841_v58 = vpack.c.bf16 %v82_v57, %v81_v56  ;;  %v80_v62 = vld [vmem:[#allocation8] sm:$0xf]  ;;  %v109_v1 = vld [vmem:[#allocation2] sm:$0x3] }
  0x4e   :  { %v124_v5 = vsub.s32 %v121_v4, %v1133_v3  ;;  %840 = vmatprep.subr.bf16.mxu0 %v1028_v59  ;;  %v844_v63 = vpack.c.bf16 %v84_v61, %v83_v60  ;;  %v1029_v0 = vmov 0.0   ;;  %vm333_vm4 = vcmask 31744   ;;  %v105_v2 = vld [vmem:[#allocation7] sm:$0xff]  ;;  %s1031_s14 = smov 32   ;;  %s1032_s0 = smov 64  }
  0x4f   :  { %842 = vmatpush3.bf16.msra.mxu0 %v841_v58  ;;  %802 = vmatprep.subr.mxu1 %v1029_v0  ;;  %vm1030_vm5 = vmmov 0   ;;  %vm416_vm6 = vcmask 254976   ;;  %s1033_s17 = smov 96   ;;  %vm731_vm7 = vcmask 130048   ;;  %vm733_vm8 = vcmask 392192   ;;  %s1035_s19 = smov [#allocation10]  }
  0x50   :  { %v125_v9 = vrot.slane %v755_v7, %v124_v5  ;;  %v132_v12 = vrot.slane %v118_v8, %v124_v5  ;;  %843 = vmatprep.subr.bf16.mxu0 %v1028_v59  ;;  %803 = vmatpush3.msk.msra.mxu1 %vm337_vm3, %v80_v62  ;;  %s744_s20 = sshll.u32 %s1035_s19, 4  ;;  %vm735_vm9 = vcmask 457728   ;;  %s745_s20 = int_to_ptr.vmem [resolvable:$true] %s744_s20 }
  0x51   :  { %804 = vmatprep.mubr.msk.f32.mxu1 %vm1030_vm5, %v1029_v0  ;;  %799 = vmatprep.mubr.msk.f32.mxu0 %vm1030_vm5, %v1029_v0  ;;  %s990_s21 = scalar_lea.vmem %s745_s20, 32  ;;  %p995_p5 = scmp.lt.s32.totalorder %s745_s20, %s745_s20 }
  0x52   :  { %v136_v11 = vrot.slane %v125_v9, %v135_v6  ;;  %v140_v15 = vrot.slane %v132_v12, %v135_v6  ;;  %805 = vmatmul.mubr.msk.f32.vlgmr.msra.gmra.mrb[0].mxu1 %vm333_vm4, %v109_v1  ;;  %846 = vmatprep.subr.bf16.mxu1 %v1028_v59  ;;  %p991_p4 = scmp.ne.s32.totalorder %s745_s20, %s990_s21  ;;  %p996_p6 = scmp.lt.s32.totalorder %s990_s21, %s990_s21 }
  0x53   :  { %845 = vmatpush3.bf16.msra.mxu0 %v844_v63  ;;  %815 = vmatprep.mubr.msk.f32.mxu1 %vm1030_vm5, %v1029_v0 }
  0x54   :  { %v143_v14 = vadd.f32 %v136_v11, %v103_v10  ;;  %v144_v16 = vadd.f32 %v140_v15, %v104_v13  ;;  %852 = vmatprep.subr.bf16.mxu0 %v1028_v59  ;;  %p997_p7 = por %p996_p6, %p995_p5 }
  0x56   :  { %882 = vtanh.f32 %v143_v14  ;;  %p998_p8 = pnand %p997_p7, %p991_p4 }
  0x57   :  { %884 = vtanh.f32 %v144_v16 }
  0x60   :  { %v883_v18 = vpop.eup %882 }
  0x61   :  { %v151_v19 = vmul.f32 %v883_v18, %v756_v17  ;;  %v885_v20 = vpop.eup %884 }
  0x62   :  { %v152_v22 = vmul.f32 %v885_v20, %v756_v17 }
  0x63   :  { %v154_v21 = vsel %vm153_vm0, %v151_v19, 0.0 }
  0x64   :  { %155 = vadd.xlane.f32.xlu0 %v154_v21  ;;  %v157_v23 = vsel %vm153_vm0, %v152_v22, 0.0 }
  0x68   :  { %158 = vadd.xlane.f32.xlu0 %v157_v23 }
  0xf1   :  { %v156_v25 = vpop.xlane.xlu0 %155 }
  0xf2   :  { %v167_v28 = vrot.slane %v156_v25, %v166_v26 }
  0xf5   :  { %v159_v27 = vpop.xlane.xlu0 %158 }
  0xf6   :  { %v171_v29 = vrot.slane %v159_v27, %v166_v26 }
  0xf8   :  { %v173_v30 = vsel %vm172_vm1, %v171_v29, %v167_v28  ;;  %v90_v28 = vld [vmem:[#allocation8 + $0x50] sm:$0xff] }
  0xf9   :  { %v176_v31 = vsel %vm175_vm2, %v173_v30, -inf  ;;  %v85_v30 = vld [vmem:[#allocation8 + $0x28] sm:$0xff] }
  0xfa   :  { %177 = vmax.xlane.f32.xlu1 %v176_v31  ;;  %v86_v31 = vld [vmem:[#allocation8 + $0x30] sm:$0xff] }
  0xfb   :  { %v853_v32 = vpack.c.bf16 %v86_v31, %v85_v30  ;;  %v95_v30 = vld [vmem:[#allocation8 + $0x78] sm:$0xff] }
 0x187   :  { %v178_v34 = vpop.xlane.xlu1 %177 }
 0x188   :  { %v183_v35 = vrot.slane %v178_v34, %v135_v6  ;;  %v187_v36 = vrot.slane %v178_v34, %v186_v33  ;;  %v92_v34 = vld [vmem:[#allocation8 + $0x60] sm:$0xff] }
 0x18a   :  { %v190_v37 = vsub.f32 %v156_v25, %v183_v35  ;;  %v191_v38 = vsub.f32 %v159_v27, %v187_v36  ;;  %v407_v25 = vpop.f32.mrb[0].mxu1  ;;  %v89_v27 = vld [vmem:[#allocation8 + $0x48] sm:$0xff]  ;;  %v87_v36 = vld [vmem:[#allocation8 + $0x38] sm:$0xff] }
 0x18b   :  { %v847_v29 = vpack.c.bf16 %v90_v28, %v89_v27  ;;  %v768_v27 = vld [vmem:[%s1225_s6 + $0x5] ss:$0 sm:$0xff]  ;;  %v93_v28 = vld [vmem:[#allocation8 + $0x68] sm:$0xff] }
 0x18c   :  { %v192_v39 = vmul.f32 1.442695, %v190_v37  ;;  %v194_v40 = vmul.f32 1.442695, %v191_v38  ;;  %v88_v37 = vld [vmem:[#allocation8 + $0x40] sm:$0xff] }
 0x18d   :  { %848 = vmatpush3.bf16.msra.mxu1 %v847_v29  ;;  %v856_v38 = vpack.c.bf16 %v88_v37, %v87_v36  ;;  %v94_v29 = vld [vmem:[#allocation8 + $0x70] sm:$0xff] }
 0x18e   :  { %886 = vpow2.f32 %v192_v39  ;;  %849 = vmatprep.subr.bf16.mxu1 %v1028_v59  ;;  %v1177_v39 = vld [vmem:[%s1220_s1] sm:$0x3]  ;;  %v859_v31 = vpack.c.bf16 %v94_v29, %v93_v28 }
 0x18f   :  { %888 = vpow2.f32 %v194_v40  ;;  %v760_v40 = vld [vmem:[%s1225_s6 + $0x1] ss:$0 sm:$0xff] }
 0x198   :  { %v887_v41 = vpop.eup %886 }
 0x199   :  { %v889_v42 = vpop.eup %888  ;;  %199 = vperm.xlu1 %880, %v887_v41  }
 0x19a   :  { %202 = vperm.xlu0 %881, %v889_v42  }
 0x218   :  { %v200_v43 = vpop.permute.xlu1 %199 }
 0x219   :  { %v203_v44 = vpop.permute.xlu0 %202  ;;  %v207_v45 = vrot.slane %v200_v43, %v166_v26 }
 0x21a   :  { %v211_v46 = vrot.slane %v203_v44, %v166_v26  ;;  %v806_v26 = vpop.f32.mrb[1].mxu1 }
 0x21c   :  { %v212_v47 = vsel %vm172_vm1, %v211_v46, %v207_v45 }
 0x21d   :  { %v214_v48 = vsel %vm175_vm2, %v212_v47, 0.0 }
 0x21e   :  { %215 = vadd.xlane.f32.xlu1 %v214_v48 }
 0x2ab   :  { %v216_v49 = vpop.xlane.xlu1 %215 }
 0x2ac   :  { %v221_v50 = vrot.slane %v216_v49, %v135_v6  ;;  %v225_v51 = vrot.slane %v216_v49, %v186_v33  ;;  %v106_v6 = vld [vmem:[#allocation7 + $0x8] sm:$0xff] }
 0x2ad   :  { %v91_v33 = vld [vmem:[#allocation8 + $0x58] sm:$0xff] }
 0x2ae   :  { %890 = vrcp.f32 %v221_v50  ;;  %v850_v35 = vpack.c.bf16 %v92_v34, %v91_v33 }
 0x2af   :  { %892 = vrcp.f32 %v225_v51 }
 0x2b0   :  { %851 = vmatpush3.bf16.msra.mxu1 %v850_v35 }
 0x2b1   :  { %858 = vmatprep.subr.bf16.mxu1 %v1028_v59 }
 0x2b3   :  { %816 = vmatmul.mubr.msk.f32.vlgmr.msra.gmra.mrb[2].mxu1 %vm153_vm0, %v1177_v39 }
 0x2b4   :  { %837 = vmatprep.mubr.msk.f32.mxu1 %vm1030_vm5, %v1029_v0  ;;  %860 = vmatpush3.bf16.msra.mxu1 %v859_v31 }
 0x2b5   :  { %861 = vmatprep.subr.bf16.mxu1 %v1028_v59 }
 0x2b8   :  { %v891_v52 = vpop.eup %890 }
 0x2b9   :  { %v229_v53 = vmul.f32 %v891_v52, %v887_v41  ;;  %v893_v54 = vpop.eup %892 }
 0x2ba   :  { %v231_v55 = vmul.f32 %v893_v54, %v889_v42 }
 0x2bb   :  { %234 = vperm.xlu0 %881, %v229_v53  }
 0x2bf   :  { %239 = vperm.xlu0 %881, %v231_v55  }
 0x33a   :  { %v1161_v4 = vpop.permute.xlu0 %234 }
 0x33b   :  { %v242_v5 = vmul.f32 %v1161_v4, %v105_v2  ;;  %v761_v2 = vld [vmem:[%s1225_s6 + $0x2] ss:$0 sm:$0xff] }
 0x33d   :  { %v244_v7 = vsel %vm153_vm0, %v242_v5, 0.0 }
 0x33e   :  { %v245_v8 = vrot.slane %v244_v7, 4  ;;  %v1165_v9 = vpop.permute.xlu0 %239 }
 0x33f   :  { %v243_v10 = vmul.f32 %v1165_v9, %v106_v6  ;;  %v762_v6 = vld [vmem:[%s1225_s6 + $0x3] ss:$0 sm:$0xff] }
 0x340   :  { %v246_v11 = vadd.f32 %v245_v8, %v244_v7 }
 0x341   :  { %v251_v12 = vsel %vm153_vm0, %v243_v10, 0.0 }
 0x342   :  { %v247_v13 = vrot.slane %v246_v11, 2  ;;  %v252_v14 = vrot.slane %v251_v12, 4 }
 0x344   :  { %v248_v15 = vadd.f32 %v247_v13, %v246_v11  ;;  %v253_v16 = vadd.f32 %v252_v14, %v251_v12  ;;  %v765_v13 = vld [vmem:[%s1225_s6 + $0x4] ss:$0 sm:$0xff]  ;;  %s1034_s6 = smov 112  }
 0x346   :  { %v254_v17 = vrot.slane %v253_v16, 2  ;;  %v249_v18 = vrot.slane %v248_v15, 1 }
 0x348   :  { %v255_v19 = vadd.f32 %v254_v17, %v253_v16  ;;  %v250_v21 = vadd.f32 %v249_v18, %v248_v15 }
 0x34a   :  { %v256_v20 = vrot.slane %v255_v19, 1 }
 0x34c   :  { %v257_v22 = vadd.f32 %v256_v20, %v255_v19 }
 0x34e   :  { %v260_v23 = vsel %vm172_vm1, %v257_v22, %v250_v21 }
 0x34f   :  { %800 = vmatmul.mubr.msk.f32.vlgmr.msra.gmra.mrb[0].mxu0 %vm153_vm0, %v260_v23 }
 0x350   :  { %826 = vmatprep.mubr.msk.f32.mxu0 %vm1030_vm5, %v1029_v0  ;;  %854 = vmatpush3.bf16.msra.mxu0 %v853_v32  ;;  %v96_v32 = vld [vmem:[#allocation8 + $0x80] sm:$0xff] }
 0x351   :  { %855 = vmatprep.subr.bf16.mxu0 %v1028_v59  ;;  %v862_v33 = vpack.c.bf16 %v96_v32, %v95_v30 }
 0x353   :  { %863 = vmatpush3.bf16.msra.mxu1 %v862_v33 }
 0x354   :  { %857 = vmatpush3.bf16.msra.mxu0 %v856_v38 }
 0x386   :  { %v519_v11 = vpop.f32.mrb[2].mxu1 }
 0x387   :  { %v817_v12 = vpop.f32.mrb[3].mxu1 }
 0x422   :  { %v329_v41 = vpop.f32.mrb[0].mxu0 }
 0x423   :  { %v408_v42 = vadd.f32 %v407_v25, %v329_v41  ;;  %v801_v43 = vpop.f32.mrb[1].mxu0 }
 0x425   :  { %v415_v44 = vadd.f32 %v760_v40, %v408_v42 }
 0x427   :  { %v417_v45 = vsel %vm416_vm6, %v415_v44, 0.0 }
 0x428   :  { %v418_v46 = vrot.slane %v417_v45, 4 }
 0x42a   :  { %v419_v47 = vadd.f32 %v418_v46, %v417_v45  ;;  %v720_v46 = vadd.s32 4294967248, %v1145_v24 }
 0x42c   :  { %v420_v48 = vrot.slane %v419_v47, 2 }
 0x42e   :  { %v421_v49 = vadd.f32 %v420_v48, %v419_v47 }
 0x430   :  { %v422_v50 = vrot.slane %v421_v49, 1 }
 0x432   :  { %v423_v51 = vadd.f32 %v422_v50, %v421_v49 }
 0x434   :  { %v425_v52 = vmul.f32 0.5, %v423_v51 }
 0x436   :  { %v426_v53 = vsub.f32 %v415_v44, %v425_v52 }
 0x438   :  { %v427_v54 = vmul.f32 %v426_v53, %v426_v53 }
 0x43a   :  { %v428_v55 = vsel %vm416_vm6, %v427_v54, 0.0 }
 0x43b   :  { %v429_v56 = vrot.slane %v428_v55, 4 }
 0x43d   :  { %v430_v57 = vadd.f32 %v429_v56, %v428_v55 }
 0x43f   :  { %v431_v58 = vrot.slane %v430_v57, 2 }
 0x441   :  { %v432_v60 = vadd.f32 %v431_v58, %v430_v57 }
 0x443   :  { %v433_v61 = vrot.slane %v432_v60, 1 }
 0x445   :  { %v434_v62 = vadd.f32 %v433_v61, %v432_v60 }
 0x447   :  { %v435_v63 = vmul.f32 0.5, %v434_v62 }
 0x449   :  { %v436_v0 = vadd.f32 1e-05, %v435_v63 }
 0x44b   :  { %894 = vrsqrt.f32 %v436_v0 }
 0x455   :  { %v895_v1 = vpop.eup %894 }
 0x456   :  { %v438_v5 = vmul.f32 %v895_v1, %v426_v53 }
 0x458   :  { %v443_v7 = vmul.f32 %v761_v2, %v438_v5 }
 0x45a   :  { %v448_v8 = vadd.f32 %v762_v6, %v443_v7 }
 0x45c   :  { %v449_v10 = vmax.f32 %v448_v8, 0.0 }
 0x45e   :  { %827 = vmatmul.mubr.msk.f32.vlgmr.msra.gmra.mrb[2].mxu0 %vm153_vm0, %v449_v10 }
 0x531   :  { %v592_v14 = vpop.f32.mrb[2].mxu0 }
 0x532   :  { %v593_v15 = vadd.f32 %v592_v14, %v519_v11  ;;  %v828_v16 = vpop.f32.mrb[3].mxu0 }
 0x534   :  { %v600_v17 = vadd.f32 %v765_v13, %v593_v15 }
 0x536   :  { %608 = vrot.lane.b32.xlu1 %v600_v17, %s1031_s14  ;;  %v766_v18 = vmul.f32 -1.442695, %v600_v17 }
 0x538   :  { %896 = vpow2.f32 %v766_v18 }
 0x53a   :  { %709 = vrot.lane.b32.xlu1 %v768_v27, %s1031_s14 }
 0x542   :  { %v897_v19 = vpop.eup %896 }
 0x543   :  { %v604_v20 = vadd.f32 1.0, %v897_v19 }
 0x545   :  { %898 = vrcp.f32 %v604_v20 }
 0x54f   :  { %v899_v21 = vpop.eup %898 }
 0x550   :  { %v618_v36 = vsub.f32 1.0, %v899_v21 }
 0x5a8   :  { %v609_v22 = vpop.permute.xlu1 %608 }
 0x5a9   :  { %v611_v23 = vmul.f32 %v899_v21, %v609_v22 }
 0x5ab   :  { %613 = vrot.lane.b32.xlu0 %v611_v23, %s1032_s0 }
 0x5ac   :  { %v710_v43 = vpop.permute.xlu1 %709 }
 0x61d   :  { %v614_v25 = vpop.permute.xlu0 %613 }
 0x61e   :  { %v616_v26 = vadd.f32 %v614_v25, %v600_v17 }
 0x620   :  { %900 = vtanh.f32 %v616_v26 }
 0x62a   :  { %v901_v34 = vpop.eup %900 }
 0x62b   :  { %620 = vrot.lane.b32.xlu0 %v901_v34, %s1033_s17 }
 0x62f   :  { %624 = vrot.lane.b32.xlu0 %v1177_v39, %s1031_s14  ;;  %v723_v39 = vsub.s32 %v720_v46, %v1133_v3 }
 0x631   :  { %v728_v47 = vrot.slane %v1165_v9, %v723_v39  ;;  %v724_v48 = vrot.slane %v1161_v4, %v723_v39 }
 0x633   :  { %v729_v52 = vsel %vm172_vm1, %v728_v47, %v724_v48 }
 0x69d   :  { %v621_v35 = vpop.permute.xlu0 %620 }
 0x69e   :  { %v623_v38 = vmul.f32 %v621_v35, %v618_v36 }
 0x6a1   :  { %v625_v37 = vpop.permute.xlu0 %624 }
 0x6a2   :  { %v627_v40 = vmul.f32 %v899_v21, %v625_v37 }
 0x6a4   :  { %v628_v41 = vadd.f32 %v627_v40, %v623_v38 }
 0x6a6   :  { %717 = vrot.lane.b32.xlu1 %v628_v41, %s1034_s6  ;;  %630 = vrot.lane.b32.xlu0 %v628_v41, %s1033_s17 }
 0x718   :  { %v631_v42 = vpop.permute.xlu0 %630  ;;  %v718_v49 = vpop.permute.xlu1 %717 }
 0x719   :  { %838 = vmatmul.mubr.msk.f32.vlgmr.msra.gmra.mrb[4].mxu1 %vm153_vm0, %v631_v42 }
 0x7ec   :  { %v700_v44 = vpop.f32.mrb[4].mxu1 }
 0x7ed   :  { %v712_v59 = vadd.f32 %v710_v43, %v700_v44  ;;  %v839_v45 = vpop.f32.mrb[5].mxu1 }
 0x7ef   :  { %714 = vrot.lane.b32.xlu0 %v712_v59, %s1033_s17 }
 0x861   :  { %v715_v50 = vpop.permute.xlu0 %714 }
 0x862   :  { %v732_v51 = vsel %vm731_vm7, %v715_v50, %v718_v49 }
 0x863   :  { %v734_v53 = vsel %vm733_vm8, %v732_v51, %v729_v52 }
 0x864   :  { %v736_v54 = vsel %vm735_vm9, %v734_v53, 0.0 }
 0x865   :  { %737 = vst [vmem:[#allocation10] sm:$0x3] %v736_v54 }
 0x866   :  { %1001 = shalt.err (!%p998_p8)
}
 0x867   :  { %s1002_s24 = scalar_lea.hbm %s1226_s7, 32 }
 0x868   :  { %p1003_p9 = scmp.ne.s32.totalorder %s1226_s7, %s1002_s24  ;;  %p1006_p10 = scmp.lt.u32.totalorder %s1002_s24, %s1226_s7 }
 0x86a   :  { %p1008_p11 = pnand %p1006_p10, %p1003_p9 }
 0x86c   :  { %1011 = shalt.err (!%p1008_p11)
}
 0x86d   :  { %747 = dma.vmem_to_hbm [thread:$0]  %s745_s20, 32, %s1226_s7, [#allocation4]  }
 0x86e   :  { %1018 = dma.done.wait [#allocation4], 32  }
 0x86f   :  { %1019 = vsyncadd [#allocation4], 4294967264 }
 0x870   :  { %751 = vsyncpa [#allocation3], 1 }
 0x871   :  { %752 = vsyncpa [#allocation6], 1 }
 0x872   :  { %753 = vsyncpa [#allocation9], 1 }
 0x873   :  { %754 = vsyncpa [#allocation4], 1 }

</bundles_post_ra>
